<compile_context>
chip_gen: v7x
topology: tpu7x:2x2x1
jax: 0.10.0
libtpu: 0.0.40
codegen_flags: <defaults>
</compile_context>

<pallas_src>
import functools
import math

import jax
import jax.numpy as jnp
from jax.experimental import pallas as pl
from jax.experimental.pallas import tpu as pltpu


def _transformer_block_kernel(
    x_ref, w_ref, vec_ref,          # inputs : data, packed weight slab, packed vector slab
    o_ref,                          # output
    xn_ref, z_ref,                  # VMEM scratch (M, L) each
    *, N, D, L, H, d_k, eps):
    C1 = L + 2 * H
    x = x_ref[...]                                    # (M, L), row m = n*D + d (n-major)

    vecs = vec_ref[...]                               # (D+2, C1) — single vreg tile
    gamma = vecs[0:D, 0:1]                            # (D, 1) BN affine scale
    beta = vecs[0:D, 1:2]                             # (D, 1) BN affine shift
    b1 = vecs[D:D + 1, :]                             # (1, C1) fused [bv | bq_sum | bk_sum]

    # ---- BatchNorm1d(dim): training-mode batch stats, single pass (sum & sum-of-squares)
    xx = x * x
    s = x[0:D, :]
    s2 = xx[0:D, :]
    for n in range(1, N):                             # static unroll over batch blocks
        s = s + x[n * D:(n + 1) * D, :]
        s2 = s2 + xx[n * D:(n + 1) * D, :]
    inv_cnt = 1.0 / (N * L)
    mu = jnp.sum(s, axis=1, keepdims=True) * inv_cnt          # (D, 1)
    msq = jnp.sum(s2, axis=1, keepdims=True) * inv_cnt        # (D, 1)
    var = msq - mu * mu                                       # biased (train-mode) variance
    a = jax.lax.rsqrt(var + eps) * gamma                      # fused BN scale (D, 1)
    c = beta - mu * a                                         # fused BN shift (D, 1)
    # TODO(synk): running_mean / running_var buffer updates (training side-effect) not emitted.

    # apply BN per batch block directly into the xn scratch (no concatenates)
    for n in range(N):
        xn_ref[n * D:(n + 1) * D, :] = x[n * D:(n + 1) * D, :] * a + c

    # ---- fused projection: [ v | q_sum | k_sum ] for ALL heads/batches in one MXU dot
    xn = xn_ref[...]                                          # (M, L)
    w = w_ref[...]                                            # (L or 2L, C1)
    p = jnp.dot(xn, w[0:L, :], preferred_element_type=jnp.float32) + b1   # (M, C1)
    v = p[:, 0:L]                                                          # (M, L)
    score = p[:, L:L + H] * p[:, L + H:L + 2 * H] * (1.0 / math.sqrt(d_k))  # (M, H)

    # ---- per-block softmax over the channel axis + per-head VPU broadcast scaling of v
    for n in range(N):                                        # static unroll, tiny
        r0, r1 = n * D, (n + 1) * D
        sblk = score[r0:r1, :]                                # (D, H)
        m_ = jnp.max(sblk, axis=0, keepdims=True)
        e = jnp.exp(sblk - m_)
        pblk = e / jnp.sum(e, axis=0, keepdims=True)          # (D, H)
        for h in range(H):                                    # per-head broadcast multiply
            c0, c1 = h * d_k, (h + 1) * d_k
            z_ref[r0:r1, c0:c1] = v[r0:r1, c0:c1] * pblk[:, h:h + 1]

    z = z_ref[...]                                            # (M, L)
    if H > 1:  # output projection Wo only exists for multi-head (matches the module)
        bo = vecs[D + 1:D + 2, 0:L]                           # (1, L)
        z = jnp.dot(z, w[L:2 * L, 0:L], preferred_element_type=jnp.float32) + bo

    # identity shortcut on the *un-normalized* x, then ReLU
    o_ref[...] = jnp.maximum(x + z, 0.0).astype(o_ref.dtype)


def transformer_block_pallas(x, params, *, num_heads, eps=1e-5):
    N, D, L = x.shape
    H = num_heads
    assert L % H == 0, "len must be divisible by num_heads"
    d_k = L // H
    M = N * D
    C1 = L + 2 * H

    # fold batch into matmul rows (cheap wrapper-side reshape, no data inflation)
    xf = x.reshape(M, L).astype(jnp.float32)

    wq, bq = params["wq"], params["bq"]          # (H, d_k, L), (H, d_k)
    wk, bk = params["wk"], params["bk"]
    wv, bv = params["wv"], params["bv"]

    # value projection of all heads fused, columns grouped head-major: (L, L)
    wv_cat = jnp.concatenate([wv[h].T for h in range(H)], axis=1)
    # q/k row-sum folding: sum_i (x @ Wq_h^T + bq_h)_i == x @ sum_i(Wq_h)_i + sum_i(bq_h)_i
    wq_sum = jnp.sum(wq, axis=1).T               # (L, H)
    wk_sum = jnp.sum(wk, axis=1).T               # (L, H)

    # --- packed weight slab: one DMA for every MXU operand ---
    w1 = jnp.concatenate([wv_cat, wq_sum, wk_sum], axis=1)               # (L, C1)
    if H > 1:
        wo_pad = jnp.pad(jnp.transpose(params["wo"]), ((0, 0), (0, C1 - L)))
        w_slab = jnp.concatenate([w1, wo_pad], axis=0)                   # (2L, C1)
        bo = params["bo"]
    else:
        w_slab = w1                                                      # (L, C1) — no dummy Wo DMA
        bo = jnp.zeros((L,), jnp.float32)

    # --- packed vector slab (one vreg tile): one DMA for every small vector ---
    #   rows 0:D, col 0 -> gamma ; col 1 -> beta     (BN affine, per channel)
    #   row  D          -> fused projection bias [bv | bq_sum | bk_sum]
    #   row  D+1, 0:L   -> bo (zeros for single-head)
    b1 = jnp.concatenate([bv.reshape(H * d_k), jnp.sum(bq, axis=1), jnp.sum(bk, axis=1)])
    vec = jnp.zeros((D + 2, C1), jnp.float32)
    vec = vec.at[0:D, 0].set(params["bn_gamma"])
    vec = vec.at[0:D, 1].set(params["bn_beta"])
    vec = vec.at[D, :].set(b1)
    vec = vec.at[D + 1, 0:L].set(bo)

    kernel = functools.partial(
        _transformer_block_kernel, N=N, D=D, L=L, H=H, d_k=d_k, eps=eps)

    vmem = pl.BlockSpec(memory_space=pltpu.MemorySpace.VMEM)
    cost = pl.CostEstimate(
        flops=2 * M * L * C1 + (2 * M * L * L if H > 1 else 0) + 12 * M * L,
        transcendentals=M * H + D,
        bytes_accessed=4 * (2 * M * L + int(w_slab.size) + int(vec.size)),
    )

    out = pl.pallas_call(
        kernel,
        out_shape=jax.ShapeDtypeStruct((M, L), jnp.float32),
        in_specs=[vmem, vmem, vmem],
        out_specs=vmem,
        scratch_shapes=[pltpu.VMEM((M, L), jnp.float32),     # xn
                        pltpu.VMEM((M, L), jnp.float32)],    # z
        cost_estimate=cost,
    )(xf, w_slab, vec)
    return out.reshape(N, D, L)


def transformer_block_reference(x, params, *, num_heads, eps=1e-5):
    """Pure-JAX reference mirroring the PyTorch forward (train-mode BN)."""
    N, D, L = x.shape
    H = num_heads
    d_k = L // H
    gamma = params["bn_gamma"][None, :, None]
    beta = params["bn_beta"][None, :, None]
    mu = jnp.mean(x, axis=(0, 2), keepdims=True)
    var = jnp.mean((x - mu) ** 2, axis=(0, 2), keepdims=True)
    xn = (x - mu) / jnp.sqrt(var + eps) * gamma + beta

    heads = []
    for h in range(H):
        q = jnp.einsum('ndl,kl->ndk', xn, params["wq"][h]) + params["bq"][h]
        k = jnp.einsum('ndl,kl->ndk', xn, params["wk"][h]) + params["bk"][h]
        v = jnp.einsum('ndl,kl->ndk', xn, params["wv"][h]) + params["bv"][h]
        score = jnp.einsum('ndi,ndj->nd', q, k) / jnp.sqrt(jnp.float32(d_k))
        score = jax.nn.softmax(score, axis=-1)
        heads.append(v * score[:, :, None])
    z = jnp.concatenate(heads, axis=-1)
    if H > 1:
        z = jnp.einsum('ndl,kl->ndk', z, params["wo"]) + params["bo"]
    return jnp.maximum(x + z, 0.0)


def init_params(key, dim, length, num_heads):
    H = num_heads
    d_k = length // H
    ks = jax.random.split(key, 10)
    bound = 1.0 / math.sqrt(length)          # nn.Linear default init bound

    def u(k, shape):
        return jax.random.uniform(k, shape, jnp.float32, -bound, bound)

    return dict(
        bn_gamma=1.0 + 0.1 * jax.random.normal(ks[0], (dim,), jnp.float32),
        bn_beta=0.1 * jax.random.normal(ks[1], (dim,), jnp.float32),
        wq=u(ks[2], (H, d_k, length)), bq=u(ks[3], (H, d_k)),
        wk=u(ks[4], (H, d_k, length)), bk=u(ks[5], (H, d_k)),
        wv=u(ks[6], (H, d_k, length)), bv=u(ks[7], (H, d_k)),
        wo=u(ks[8], (length, length)), bo=u(ks[9], (length,)),
    )


if __name__ == "__main__":
    key = jax.random.PRNGKey(0)
    kp, kx = jax.random.split(key)

    # TransformerBlock(dim=4, len=16, num_heads=2); x : (N, dim, len)
    N, dim, length, num_heads = 2, 4, 16, 2
    params = init_params(kp, dim, length, num_heads)
    x = jax.random.normal(kx, (N, dim, length), dtype=jnp.float32)

    out = transformer_block_pallas(x, params, num_heads=num_heads)
    out = jax.block_until_ready(out)

    ref = transformer_block_reference(x, params, num_heads=num_heads)
    assert out.shape == ref.shape, (out.shape, ref.shape)
    err = float(jnp.max(jnp.abs(out - ref)))
    assert jnp.allclose(out, ref, atol=1e-4, rtol=1e-4), f"max abs err {err}"

    print("KERNEL_OK")
</pallas_src>

<mosaic_0001>
module attributes {stable_mosaic.version = 11 : i64} {
  func.func @_transformer_block_kernel(%arg0: memref<8x16xf32, #tpu.memory_space<vmem>>, %arg1: memref<32x20xf32, #tpu.memory_space<vmem>>, %arg2: memref<6x20xf32, #tpu.memory_space<vmem>>, %arg3: memref<8x16xf32, #tpu.memory_space<vmem>>, %arg4: memref<8x16xf32, #tpu.memory_space<vmem>>, %arg5: memref<8x16xf32, #tpu.memory_space<vmem>>) attributes {dimension_semantics = [], scalar_prefetch = 0 : i64, scratch_operands = 2 : i64, tpu.core_type = #tpu.core_type<tc>} {
    %c0 = arith.constant 0 : index
    %c0_0 = arith.constant 0 : index
    %0 = vector.load %arg0[%c0, %c0_0] : memref<8x16xf32, #tpu.memory_space<vmem>>, vector<8x16xf32>
    %c0_1 = arith.constant 0 : index
    %c0_2 = arith.constant 0 : index
    %1 = vector.load %arg2[%c0_1, %c0_2] : memref<6x20xf32, #tpu.memory_space<vmem>>, vector<6x20xf32>
    %2 = vector.extract_strided_slice %1 {offsets = [0, 0], sizes = [4, 1], strides = [1, 1]} : vector<6x20xf32> to vector<4x1xf32>
    %3 = vector.extract_strided_slice %1 {offsets = [0, 1], sizes = [4, 1], strides = [1, 1]} : vector<6x20xf32> to vector<4x1xf32>
    %4 = vector.extract_strided_slice %1 {offsets = [4, 0], sizes = [1, 20], strides = [1, 1]} : vector<6x20xf32> to vector<1x20xf32>
    %5 = arith.mulf %0, %0 : vector<8x16xf32>
    %6 = vector.extract_strided_slice %0 {offsets = [0, 0], sizes = [4, 16], strides = [1, 1]} : vector<8x16xf32> to vector<4x16xf32>
    %7 = vector.extract_strided_slice %5 {offsets = [0, 0], sizes = [4, 16], strides = [1, 1]} : vector<8x16xf32> to vector<4x16xf32>
    %8 = vector.extract_strided_slice %0 {offsets = [4, 0], sizes = [4, 16], strides = [1, 1]} : vector<8x16xf32> to vector<4x16xf32>
    %9 = arith.addf %6, %8 : vector<4x16xf32>
    %10 = vector.extract_strided_slice %5 {offsets = [4, 0], sizes = [4, 16], strides = [1, 1]} : vector<8x16xf32> to vector<4x16xf32>
    %11 = arith.addf %7, %10 : vector<4x16xf32>
    %cst = arith.constant dense<0.000000e+00> : vector<4xf32>
    %12 = vector.multi_reduction <add>, %9, %cst [1] : vector<4x16xf32> to vector<4xf32>
    %13 = vector.shape_cast %12 : vector<4xf32> to vector<4x1xf32>
    %cst_3 = arith.constant 3.125000e-02 : f32
    %14 = vector.broadcast %cst_3 : f32 to vector<4x1xf32>
    %15 = arith.mulf %13, %14 : vector<4x1xf32>
    %cst_4 = arith.constant dense<0.000000e+00> : vector<4xf32>
    %16 = vector.multi_reduction <add>, %11, %cst_4 [1] : vector<4x16xf32> to vector<4xf32>
    %17 = vector.shape_cast %16 : vector<4xf32> to vector<4x1xf32>
    %cst_5 = arith.constant 3.125000e-02 : f32
    %18 = vector.broadcast %cst_5 : f32 to vector<4x1xf32>
    %19 = arith.mulf %17, %18 : vector<4x1xf32>
    %20 = arith.mulf %15, %15 : vector<4x1xf32>
    %21 = arith.subf %19, %20 : vector<4x1xf32>
    %cst_6 = arith.constant 9.99999974E-6 : f32
    %22 = vector.broadcast %cst_6 : f32 to vector<4x1xf32>
    %23 = arith.addf %21, %22 : vector<4x1xf32>
    %24 = math.rsqrt %23 : vector<4x1xf32>
    %25 = arith.mulf %24, %2 : vector<4x1xf32>
    %26 = arith.mulf %15, %25 : vector<4x1xf32>
    %27 = arith.subf %3, %26 : vector<4x1xf32>
    %28 = vector.extract_strided_slice %0 {offsets = [0, 0], sizes = [4, 16], strides = [1, 1]} : vector<8x16xf32> to vector<4x16xf32>
    %29 = vector.broadcast %25 : vector<4x1xf32> to vector<4x16xf32>
    %30 = arith.mulf %28, %29 : vector<4x16xf32>
    %31 = vector.broadcast %27 : vector<4x1xf32> to vector<4x16xf32>
    %32 = arith.addf %30, %31 : vector<4x16xf32>
    %c0_7 = arith.constant 0 : index
    %c0_8 = arith.constant 0 : index
    %33 = vector.load %arg4[%c0_7, %c0_8] : memref<8x16xf32, #tpu.memory_space<vmem>>, vector<4x16xf32>
    tpu.vector_store %arg4[%c0_7, %c0_8], %32 {strides = array<i32>} : memref<8x16xf32, #tpu.memory_space<vmem>>, vector<4x16xf32>,
    %34 = vector.extract_strided_slice %0 {offsets = [4, 0], sizes = [4, 16], strides = [1, 1]} : vector<8x16xf32> to vector<4x16xf32>
    %35 = vector.broadcast %25 : vector<4x1xf32> to vector<4x16xf32>
    %36 = arith.mulf %34, %35 : vector<4x16xf32>
    %37 = vector.broadcast %27 : vector<4x1xf32> to vector<4x16xf32>
    %38 = arith.addf %36, %37 : vector<4x16xf32>
    %c4 = arith.constant 4 : index
    %c0_9 = arith.constant 0 : index
    %39 = vector.load %arg4[%c4, %c0_9] : memref<8x16xf32, #tpu.memory_space<vmem>>, vector<4x16xf32>
    tpu.vector_store %arg4[%c4, %c0_9], %38 {strides = array<i32>} : memref<8x16xf32, #tpu.memory_space<vmem>>, vector<4x16xf32>,
    %c0_10 = arith.constant 0 : index
    %c0_11 = arith.constant 0 : index
    %40 = vector.load %arg4[%c0_10, %c0_11] : memref<8x16xf32, #tpu.memory_space<vmem>>, vector<8x16xf32>
    %c0_12 = arith.constant 0 : index
    %c0_13 = arith.constant 0 : index
    %41 = vector.load %arg1[%c0_12, %c0_13] : memref<32x20xf32, #tpu.memory_space<vmem>>, vector<32x20xf32>
    %42 = vector.extract_strided_slice %41 {offsets = [0, 0], sizes = [16, 20], strides = [1, 1]} : vector<32x20xf32> to vector<16x20xf32>
    %cst_14 = arith.constant dense<0.000000e+00> : vector<8x20xf32>
    %43 = tpu.matmul %40, %42, %cst_14 {dimension_numbers = #tpu.dot_dimension_numbers<[1], [0], [0], [1], [0, 0, 1, 1], [], []>} : vector<8x16xf32>, vector<16x20xf32>, vector<8x20xf32> -> vector<8x20xf32>
    %44 = vector.broadcast %4 : vector<1x20xf32> to vector<8x20xf32>
    %45 = arith.addf %43, %44 : vector<8x20xf32>
    %46 = vector.extract_strided_slice %45 {offsets = [0, 0], sizes = [8, 16], strides = [1, 1]} : vector<8x20xf32> to vector<8x16xf32>
    %47 = vector.extract_strided_slice %45 {offsets = [0, 16], sizes = [8, 2], strides = [1, 1]} : vector<8x20xf32> to vector<8x2xf32>
    %48 = vector.extract_strided_slice %45 {offsets = [0, 18], sizes = [8, 2], strides = [1, 1]} : vector<8x20xf32> to vector<8x2xf32>
    %49 = arith.mulf %47, %48 : vector<8x2xf32>
    %cst_15 = arith.constant 0.353553385 : f32
    %50 = vector.broadcast %cst_15 : f32 to vector<8x2xf32>
    %51 = arith.mulf %49, %50 : vector<8x2xf32>
    %52 = vector.extract_strided_slice %51 {offsets = [0, 0], sizes = [4, 2], strides = [1, 1]} : vector<8x2xf32> to vector<4x2xf32>
    %cst_16 = arith.constant dense<0xFF800000> : vector<2xf32>
    %53 = vector.multi_reduction <maximumf>, %52, %cst_16 [0] : vector<4x2xf32> to vector<2xf32>
    %54 = vector.shape_cast %53 : vector<2xf32> to vector<1x2xf32>
    %55 = vector.broadcast %54 : vector<1x2xf32> to vector<4x2xf32>
    %56 = arith.subf %52, %55 : vector<4x2xf32>
    %57 = math.exp %56 : vector<4x2xf32>
    %cst_17 = arith.constant dense<0.000000e+00> : vector<2xf32>
    %58 = vector.multi_reduction <add>, %57, %cst_17 [0] : vector<4x2xf32> to vector<2xf32>
    %59 = vector.shape_cast %58 : vector<2xf32> to vector<1x2xf32>
    %60 = vector.broadcast %59 : vector<1x2xf32> to vector<4x2xf32>
    %61 = arith.divf %57, %60 : vector<4x2xf32>
    %62 = vector.extract_strided_slice %46 {offsets = [0, 0], sizes = [4, 8], strides = [1, 1]} : vector<8x16xf32> to vector<4x8xf32>
    %63 = vector.extract_strided_slice %61 {offsets = [0, 0], sizes = [4, 1], strides = [1, 1]} : vector<4x2xf32> to vector<4x1xf32>
    %64 = vector.broadcast %63 : vector<4x1xf32> to vector<4x8xf32>
    %65 = arith.mulf %62, %64 : vector<4x8xf32>
    %c0_18 = arith.constant 0 : index
    %c0_19 = arith.constant 0 : index
    %66 = vector.load %arg5[%c0_18, %c0_19] : memref<8x16xf32, #tpu.memory_space<vmem>>, vector<4x8xf32>
    tpu.vector_store %arg5[%c0_18, %c0_19], %65 {strides = array<i32>} : memref<8x16xf32, #tpu.memory_space<vmem>>, vector<4x8xf32>,
    %67 = vector.extract_strided_slice %46 {offsets = [0, 8], sizes = [4, 8], strides = [1, 1]} : vector<8x16xf32> to vector<4x8xf32>
    %68 = vector.extract_strided_slice %61 {offsets = [0, 1], sizes = [4, 1], strides = [1, 1]} : vector<4x2xf32> to vector<4x1xf32>
    %69 = vector.broadcast %68 : vector<4x1xf32> to vector<4x8xf32>
    %70 = arith.mulf %67, %69 : vector<4x8xf32>
    %c0_20 = arith.constant 0 : index
    %c8 = arith.constant 8 : index
    %71 = vector.load %arg5[%c0_20, %c8] : memref<8x16xf32, #tpu.memory_space<vmem>>, vector<4x8xf32>
    tpu.vector_store %arg5[%c0_20, %c8], %70 {strides = array<i32>} : memref<8x16xf32, #tpu.memory_space<vmem>>, vector<4x8xf32>,
    %72 = vector.extract_strided_slice %51 {offsets = [4, 0], sizes = [4, 2], strides = [1, 1]} : vector<8x2xf32> to vector<4x2xf32>
    %cst_21 = arith.constant dense<0xFF800000> : vector<2xf32>
    %73 = vector.multi_reduction <maximumf>, %72, %cst_21 [0] : vector<4x2xf32> to vector<2xf32>
    %74 = vector.shape_cast %73 : vector<2xf32> to vector<1x2xf32>
    %75 = vector.broadcast %74 : vector<1x2xf32> to vector<4x2xf32>
    %76 = arith.subf %72, %75 : vector<4x2xf32>
    %77 = math.exp %76 : vector<4x2xf32>
    %cst_22 = arith.constant dense<0.000000e+00> : vector<2xf32>
    %78 = vector.multi_reduction <add>, %77, %cst_22 [0] : vector<4x2xf32> to vector<2xf32>
    %79 = vector.shape_cast %78 : vector<2xf32> to vector<1x2xf32>
    %80 = vector.broadcast %79 : vector<1x2xf32> to vector<4x2xf32>
    %81 = arith.divf %77, %80 : vector<4x2xf32>
    %82 = vector.extract_strided_slice %46 {offsets = [4, 0], sizes = [4, 8], strides = [1, 1]} : vector<8x16xf32> to vector<4x8xf32>
    %83 = vector.extract_strided_slice %81 {offsets = [0, 0], sizes = [4, 1], strides = [1, 1]} : vector<4x2xf32> to vector<4x1xf32>
    %84 = vector.broadcast %83 : vector<4x1xf32> to vector<4x8xf32>
    %85 = arith.mulf %82, %84 : vector<4x8xf32>
    %c4_23 = arith.constant 4 : index
    %c0_24 = arith.constant 0 : index
    %86 = vector.load %arg5[%c4_23, %c0_24] : memref<8x16xf32, #tpu.memory_space<vmem>>, vector<4x8xf32>
    tpu.vector_store %arg5[%c4_23, %c0_24], %85 {strides = array<i32>} : memref<8x16xf32, #tpu.memory_space<vmem>>, vector<4x8xf32>,
    %87 = vector.extract_strided_slice %46 {offsets = [4, 8], sizes = [4, 8], strides = [1, 1]} : vector<8x16xf32> to vector<4x8xf32>
    %88 = vector.extract_strided_slice %81 {offsets = [0, 1], sizes = [4, 1], strides = [1, 1]} : vector<4x2xf32> to vector<4x1xf32>
    %89 = vector.broadcast %88 : vector<4x1xf32> to vector<4x8xf32>
    %90 = arith.mulf %87, %89 : vector<4x8xf32>
    %c4_25 = arith.constant 4 : index
    %c8_26 = arith.constant 8 : index
    %91 = vector.load %arg5[%c4_25, %c8_26] : memref<8x16xf32, #tpu.memory_space<vmem>>, vector<4x8xf32>
    tpu.vector_store %arg5[%c4_25, %c8_26], %90 {strides = array<i32>} : memref<8x16xf32, #tpu.memory_space<vmem>>, vector<4x8xf32>,
    %c0_27 = arith.constant 0 : index
    %c0_28 = arith.constant 0 : index
    %92 = vector.load %arg5[%c0_27, %c0_28] : memref<8x16xf32, #tpu.memory_space<vmem>>, vector<8x16xf32>
    %93 = vector.extract_strided_slice %1 {offsets = [5, 0], sizes = [1, 16], strides = [1, 1]} : vector<6x20xf32> to vector<1x16xf32>
    %94 = vector.extract_strided_slice %41 {offsets = [16, 0], sizes = [16, 16], strides = [1, 1]} : vector<32x20xf32> to vector<16x16xf32>
    %cst_29 = arith.constant dense<0.000000e+00> : vector<8x16xf32>
    %95 = tpu.matmul %92, %94, %cst_29 {dimension_numbers = #tpu.dot_dimension_numbers<[1], [0], [0], [1], [0, 0, 1, 1], [], []>} : vector<8x16xf32>, vector<16x16xf32>, vector<8x16xf32> -> vector<8x16xf32>
    %96 = vector.broadcast %93 : vector<1x16xf32> to vector<8x16xf32>
    %97 = arith.addf %95, %96 : vector<8x16xf32>
    %98 = arith.addf %0, %97 : vector<8x16xf32>
    %cst_30 = arith.constant 0.000000e+00 : f32
    %99 = vector.broadcast %cst_30 : f32 to vector<8x16xf32>
    %100 = arith.maximumf %98, %99 : vector<8x16xf32>
    %c0_31 = arith.constant 0 : index
    %c0_32 = arith.constant 0 : index
    %101 = vector.load %arg3[%c0_31, %c0_32] : memref<8x16xf32, #tpu.memory_space<vmem>>, vector<8x16xf32>
    tpu.vector_store %arg3[%c0_31, %c0_32], %100 {strides = array<i32>} : memref<8x16xf32, #tpu.memory_space<vmem>>, vector<8x16xf32>,
    return
  }
}

</mosaic_0001>

<bundles_post_ra>
// kernel: tpu_custom_call.1
= control target key start
LH: loop header
LB: loop body
LE: loop exit
PB: predicated region body
PF: predicated region fallthrough
CT: control target
= control target key end

     0   :  { %s499_s0 = inlined_call_operand.vmem [shape: f32[8,16], index: 0, kind: input, shape index: {}]   ;;  %s500_s1 = inlined_call_operand.vmem [shape: f32[32,20], index: 1, kind: input, shape index: {}]   ;;  %s501_s2 = inlined_call_operand.vmem [shape: f32[6,20], index: 2, kind: input, shape index: {}]   ;;  %s502_s3 = inlined_call_operand.hbm [shape: f32[8,16], index: 3, kind: output, shape index: {}]  }
   0x1   :  { %v436_v0 = vld [vmem:[%s499_s0] sm:$0xff] }
   0x2   :  { %8 = vsyncpa [#allocation5], 0  ;;  %v19_v1 = vrot.slane %v436_v0, 4  ;;  %v17_v2 = vmul.f32 %v436_v0, %v436_v0  ;;  %vm26_vm0 = vcmask 125952   ;;  %v403_v8 = vmov 0   ;;  %s405_s15 = smov 1  }
   0x3   :  { %362 = vset.pattern.permute.xlu1 %v403_v8  ;;  %v404_v16 = vmov 1   ;;  %v447_v17 = vld [vmem:[%s501_s2] sm:$0x3f]  ;;  %v69_v24 = vld [vmem:[%s500_s1 + $0x8] sm:$0xff]  ;;  %v406_v25 = vmov 0.0|0.0   ;;  %vm407_vm1 = vmmov 0   ;;  %v72_v37 = vlaneseq }
   0x4   :  { %v21_v3 = vadd.f32 %v19_v1, %v436_v0  ;;  %v23_v4 = vrot.slane %v17_v2, 4  ;;  %363 = vset.pattern.permute.xlu0 %v404_v16  ;;  %v68_v23 = vld [vmem:[%s500_s1] sm:$0xff]  ;;  %346 = vmatprep.subr.bf16.mxu0 %v406_v25  ;;  %v408_v27 = vmov 0.0   ;;  %vm65_vm2 = vcmask 130052   ;;  %s409_s2 = smov 126  }
   0x5   :  { %v347_v26 = vpack.c.bf16 %v69_v24, %v68_v23  ;;  %336 = vmatprep.mubr.msk.f32.mxu0 %vm407_vm1, %v408_v27  ;;  %349 = vmatprep.subr.bf16.mxu1 %v406_v25  ;;  %vm76_vm3 = vcmask 130048   ;;  %v461_v38 = vshrl.u32 %v72_v37, 7  ;;  %v410_v44 = vmov 16  }
   0x6   :  { %v27_v5 = vsel %vm26_vm0, %v21_v3, 0.0  ;;  %v25_v6 = vadd.f32 %v23_v4, %v17_v2  ;;  %343 = vmatprep.mubr.msk.f32.mxu1 %vm407_vm1, %v408_v27  ;;  %v411_v45 = vmov 17   ;;  %vm156_vm4 = vcmask 142464   ;;  %v71_v27 = vld [vmem:[%s500_s1 + $0x18] sm:$0xff] }
   0x7   :  { %28 = vadd.xlane.f32.xlu0 %v27_v5  ;;  %348 = vmatpush3.bf16.msra.mxu0 %v347_v26  ;;  %v74_v39 = vsub.s32 4, %v461_v38  ;;  %vm191_vm5 = vcmask 146564   ;;  %v70_v26 = vld [vmem:[%s500_s1 + $0x10] sm:$0xff]  ;;  %vm182_vm6 = vcmask 60416   ;;  %vm189_vm7 = vcmask 126016   ;;  %s412_s1 = smov [#allocation4]  }
   0x8   :  { %v31_v7 = vsel %vm26_vm0, %v25_v6, 0.0  ;;  %vm220_vm8 = vcmask 64516   ;;  %vm227_vm9 = vcmask 130116   ;;  %s316_s24 = sshll.u32 %s412_s1, 4  ;;  %s317_s24 = int_to_ptr.vmem [resolvable:$true] %s316_s24 }
   0x9   :  { %v75_v40 = vrot.slane %v447_v17, %v74_v39  ;;  %v232_v39 = vsub.s32 5, %v461_v38  ;;  %s379_s25 = scalar_lea.vmem %s317_s24, 128  ;;  %p384_p1 = scmp.lt.s32.totalorder %s317_s24, %s317_s24 }
   0xa   :  { %p380_p0 = scmp.ne.s32.totalorder %s317_s24, %s379_s25  ;;  %p385_p2 = scmp.lt.s32.totalorder %s379_s25, %s379_s25 }
   0xb   :  { %32 = vadd.xlane.f32.xlu0 %v31_v7 }
   0xc   :  { %p386_p3 = por %p385_p2, %p384_p1 }
   0xe   :  { %p387_p4 = pnand %p386_p3, %p380_p0 }
  0x94   :  { %v29_v9 = vpop.xlane.xlu0 %28 }
  0x95   :  { %v30_v10 = vmul.f32 0.03125, %v29_v9 }
  0x97   :  { %v35_v12 = vmul.f32 %v30_v10, %v30_v10 }
  0x98   :  { %v33_v11 = vpop.xlane.xlu0 %32 }
  0x99   :  { %v34_v13 = vmul.f32 0.03125, %v33_v11 }
  0x9b   :  { %v36_v14 = vsub.f32 %v34_v13, %v35_v12 }
  0x9d   :  { %v37_v15 = vadd.f32 1e-05, %v36_v14 }
  0x9f   :  { %369 = vrsqrt.f32 %v37_v15 }
  0xa9   :  { %v370_v18 = vpop.eup %369 }
  0xaa   :  { %v39_v19 = vmul.f32 %v370_v18, %v447_v17 }
  0xac   :  { %v40_v20 = vmul.f32 %v39_v19, %v30_v10 }
  0xae   :  { %42 = vrot.lane.b32.xlu1 %v40_v20, %s405_s15 }
  0xb2   :  { %48 = vperm.xlu1 %362, %v39_v19  }
  0xb6   :  { %364 = vset.pattern.permute.xlu1 %v410_v44 }
 0x120   :  { %v43_v21 = vpop.permute.xlu1 %42 }
 0x121   :  { %v45_v22 = vsub.f32 %v447_v17, %v43_v21 }
 0x123   :  { %54 = vperm.xlu0 %363, %v45_v22  }
 0x127   :  { %368 = vset.pattern.permute.xlu0 %v411_v45 }
 0x131   :  { %v49_v28 = vpop.permute.xlu1 %48 }
 0x132   :  { %v59_v29 = vrot.slane %v49_v28, 4  ;;  %v51_v30 = vmul.f32 %v49_v28, %v436_v0  ;;  %v350_v28 = vpack.c.bf16 %v71_v27, %v70_v26 }
 0x134   :  { %v61_v32 = vmul.f32 %v59_v29, %v436_v0  ;;  %351 = vmatpush3.bf16.msra.mxu1 %v350_v28 }
 0x1a2   :  { %v55_v31 = vpop.permute.xlu0 %54 }
 0x1a3   :  { %v57_v33 = vadd.f32 %v55_v31, %v51_v30  ;;  %v62_v34 = vrot.slane %v55_v31, 4 }
 0x1a5   :  { %58 = vst.msk [vmem:[#allocation2] sm:$0xf] %vm26_vm0, %v57_v33  ;;  %v64_v35 = vadd.f32 %v62_v34, %v61_v32 }
 0x1a7   :  { %66 = vst.msk [vmem:[#allocation2] sm:$0xf0] %vm65_vm2, %v64_v35 }
 0x1ae   :  { %v67_v36 = vld [vmem:[#allocation2] sm:$0xff] }
 0x1af   :  { %337 = vmatmul.mubr.msk.f32.vlgmr.msra.gmra.mrb[0].mxu0 %vm76_vm3, %v67_v36 }
 0x282   :  { %v146_v41 = vpop.f32.mrb[0].mxu0 }
 0x283   :  { %v465_v42 = vadd.f32 %v146_v41, %v75_v40  ;;  %v338_v43 = vpop.f32.mrb[1].mxu0  ;;  %v233_v40 = vrot.slane %v447_v17, %v232_v39 }
 0x285   :  { %151 = vrot.lane.b32.xlu1 %v465_v42, %s409_s2 }
 0x2f7   :  { %v152_v46 = vpop.permute.xlu1 %151 }
 0x2f8   :  { %v154_v47 = vmul.f32 %v152_v46, %v465_v42 }
 0x2fa   :  { %v155_v48 = vmul.f32 0.35355338, %v154_v47 }
 0x2fc   :  { %v157_v49 = vsel %vm156_vm4, %v155_v48, -inf  ;;  %v192_v50 = vsel %vm191_vm5, %v155_v48, -inf }
 0x2fd   :  { %v158_v51 = vrot.slane %v157_v49, 4  ;;  %v193_v52 = vrot.slane %v192_v50, 4 }
 0x2ff   :  { %v159_v53 = vmax.f32 %v157_v49, %v158_v51  ;;  %v194_v54 = vmax.f32 %v192_v50, %v193_v52 }
 0x301   :  { %v160_v55 = vrot.slane %v159_v53, 2  ;;  %v195_v56 = vrot.slane %v194_v54, 2 }
 0x303   :  { %v161_v57 = vmax.f32 %v159_v53, %v160_v55  ;;  %v196_v58 = vmax.f32 %v194_v54, %v195_v56 }
 0x305   :  { %v162_v59 = vrot.slane %v161_v57, 1  ;;  %v197_v60 = vrot.slane %v196_v58, 1 }
 0x307   :  { %v163_v61 = vmax.f32 %v161_v57, %v162_v59  ;;  %v198_v62 = vmax.f32 %v196_v58, %v197_v60 }
 0x309   :  { %v164_v63 = vsub.f32 %v155_v48, %v163_v61  ;;  %v199_v1 = vsub.f32 %v155_v48, %v198_v62 }
 0x30b   :  { %v165_v2 = vmul.f32 1.442695, %v164_v63  ;;  %v200_v3 = vmul.f32 1.442695, %v199_v1 }
 0x30d   :  { %371 = vpow2.f32 %v165_v2 }
 0x30e   :  { %373 = vpow2.f32 %v200_v3 }
 0x317   :  { %v372_v4 = vpop.eup %371 }
 0x318   :  { %v374_v5 = vpop.eup %373  ;;  %v167_v6 = vsel %vm156_vm4, %v372_v4, 0.0 }
 0x319   :  { %v168_v7 = vrot.slane %v167_v6, 4  ;;  %v203_v8 = vrot.slane %v374_v5, 4 }
 0x31b   :  { %v169_v9 = vadd.f32 %v168_v7, %v167_v6  ;;  %v205_v10 = vsel %vm156_vm4, %v203_v8, 0.0 }
 0x31c   :  { %v206_v11 = vrot.slane %v205_v10, 4 }
 0x31d   :  { %v170_v12 = vrot.slane %v169_v9, 2 }
 0x31e   :  { %v207_v13 = vadd.f32 %v206_v11, %v205_v10 }
 0x31f   :  { %v171_v14 = vadd.f32 %v170_v12, %v169_v9 }
 0x320   :  { %v208_v15 = vrot.slane %v207_v13, 2 }
 0x321   :  { %v172_v16 = vrot.slane %v171_v14, 1 }
 0x322   :  { %v209_v18 = vadd.f32 %v208_v15, %v207_v13 }
 0x323   :  { %v173_v19 = vadd.f32 %v172_v16, %v171_v14 }
 0x324   :  { %v210_v20 = vrot.slane %v209_v18, 1 }
 0x325   :  { %375 = vrcp.f32 %v173_v19 }
 0x326   :  { %v211_v21 = vadd.f32 %v210_v20, %v209_v18 }
 0x328   :  { %377 = vrcp.f32 %v211_v21 }
 0x32f   :  { %v376_v22 = vpop.eup %375 }
 0x330   :  { %v175_v23 = vmul.f32 %v376_v22, %v372_v4 }
 0x332   :  { %178 = vperm.xlu1 %364, %v175_v23   ;;  %v378_v24 = vpop.eup %377 }
 0x333   :  { %v213_v25 = vmul.f32 %v378_v24, %v374_v5 }
 0x336   :  { %365 = vset.pattern.permute.xlu1 %v411_v45 }
 0x337   :  { %185 = vperm.xlu1 %365, %v175_v23  }
 0x33b   :  { %366 = vset.pattern.permute.xlu1 %v410_v44 }
 0x33c   :  { %216 = vperm.xlu1 %366, %v213_v25  }
 0x340   :  { %367 = vset.pattern.permute.xlu1 %v411_v45 }
 0x341   :  { %223 = vperm.xlu1 %367, %v213_v25  }
 0x3b1   :  { %v179_v29 = vpop.permute.xlu1 %178 }
 0x3b2   :  { %v181_v30 = vmul.f32 %v179_v29, %v465_v42 }
 0x3b4   :  { %183 = vst.msk [vmem:[#allocation3] sm:$0xf] %vm182_vm6, %v181_v30 }
 0x3b6   :  { %v186_v31 = vpop.permute.xlu1 %185 }
 0x3b7   :  { %v188_v32 = vmul.f32 %v186_v31, %v465_v42 }
 0x3b9   :  { %190 = vst.msk [vmem:[#allocation3] sm:$0xf] %vm189_vm7, %v188_v32 }
 0x3bb   :  { %v217_v33 = vpop.permute.xlu1 %216 }
 0x3bc   :  { %v219_v34 = vmul.f32 %v217_v33, %v465_v42 }
 0x3be   :  { %221 = vst.msk [vmem:[#allocation3] sm:$0xf0] %vm220_vm8, %v219_v34 }
 0x3c0   :  { %v224_v35 = vpop.permute.xlu1 %223 }
 0x3c1   :  { %v226_v36 = vmul.f32 %v224_v35, %v465_v42 }
 0x3c3   :  { %228 = vst.msk [vmem:[#allocation3] sm:$0xf0] %vm227_vm9, %v226_v36 }
 0x3ca   :  { %v229_v37 = vld [vmem:[#allocation3] sm:$0xff] }
 0x3cb   :  { %344 = vmatmul.mubr.msk.f32.vlgmr.msra.gmra.mrb[0].mxu1 %vm76_vm3, %v229_v37 }
 0x49e   :  { %v303_v41 = vpop.f32.mrb[0].mxu1 }
 0x49f   :  { %v304_v43 = vadd.f32 %v303_v41, %v233_v40  ;;  %v345_v44 = vpop.f32.mrb[1].mxu1 }
 0x4a1   :  { %v307_v45 = vadd.f32 %v304_v43, %v436_v0 }
 0x4a3   :  { %v308_v46 = vmax.f32 %v307_v45, 0.0 }
 0x4a5   :  { %309 = vst.msk [vmem:[#allocation4] sm:$0xff] %vm76_vm3, %v308_v46 }
 0x4a6   :  { %390 = shalt.err (!%p387_p4)
}
 0x4a7   :  { %s391_s28 = scalar_lea.hbm %s502_s3, 128 }
 0x4a8   :  { %p392_p5 = scmp.ne.s32.totalorder %s502_s3, %s391_s28  ;;  %p395_p6 = scmp.lt.u32.totalorder %s391_s28, %s502_s3 }
 0x4aa   :  { %p397_p7 = pnand %p395_p6, %p392_p5 }
 0x4ac   :  { %400 = shalt.err (!%p397_p7)
}
 0x4ad   :  { %319 = dma.vmem_to_hbm [thread:$0]  %s317_s24, 128, %s502_s3, [#allocation5]  }
 0x4ae   :  { %401 = dma.done.wait [#allocation5], 128  }
 0x4af   :  { %402 = vsyncadd [#allocation5], 4294967168 }
 0x4b0   :  { %323 = vsyncpa [#allocation5], 1 }

</bundles_post_ra>
